<compile_context>
chip_gen: v7x
topology: tpu7x:2x2x1
jax: 0.10.0
libtpu: 0.0.40
codegen_flags: <defaults>
</compile_context>

<pallas_src>
import functools

import jax
import jax.numpy as jnp
from jax.experimental import pallas as pl
from jax.experimental.pallas import tpu as pltpu


def _dwconv3x3_kernel(x_ref, w_ref, b_ref, o_ref, *, C):
    # x_ref: (1, H, W*C) one batch element, channels folded into the lane axis
    # w_ref: (9, W*C)    per-tap weights, tiled across W; border lanes zeroed
    # b_ref: (1, W*C)    bias tiled across W (f32)
    # o_ref: (1, H, W*C)
    _, H, WC = x_ref.shape
    x = x_ref[0]                                   # native dtype, no f32 copy
    row = jax.lax.broadcasted_iota(jnp.int32, (H, WC), 0)
    zero = jnp.zeros_like(x)

    # Row-shifted variants (sublane rotates on the XLU). The wrapped boundary
    # row is zeroed -> implements the H-direction zero padding in-kernel.
    x_up = jnp.where(row == 0, zero, pltpu.roll(x, 1, 0))          # x[h-1, :]
    x_dn = jnp.where(row == H - 1, zero, pltpu.roll(x, H - 1, 0))  # x[h+1, :]
    rows = (x_up, x, x_dn)

    w = w_ref[...]                                 # (9, W*C), input dtype

    # Accumulator starts at the bias (saves one full VALU pass).
    acc = jnp.broadcast_to(b_ref[...], (H, WC)).astype(jnp.float32)

    for dh in range(3):
        r = rows[dh]
        for dw in range(3):
            if dw == 0:
                tap = pltpu.roll(r, C, 1)          # column w-1 (lane rotate)
            elif dw == 1:
                tap = r                            # column w
            else:
                tap = pltpu.roll(r, WC - C, 1)     # column w+1
            k = dh * 3 + dw
            # Wrapped border columns are killed by the zeroed weight lanes.
            acc = acc + (tap * w[k:k + 1, :]).astype(jnp.float32)

    o_ref[0] = acc.astype(o_ref.dtype)


def dwconv_forward(x, weight, bias, H, W):
    """x: (B, N, C) with N == H*W; weight: (C, 1, 3, 3) (torch layout);
    bias: (C,). Returns (B, N, C)."""
    B, N, C = x.shape
    assert N == H * W
    WC = W * C

    # (B, N, C) -> (B, H, W*C): pure row-major reshape, no data movement,
    # no padding pass.
    x2 = x.reshape(B, H, WC)

    # torch (C, 1, 3, 3) -> (3, 3, C) -> per-tap weights tiled across W on the
    # lane axis: (9, W*C). Zero the lanes whose tap would read across the
    # left/right image border (folds W-direction zero padding into weights).
    w_hwc = jnp.transpose(weight[:, 0], (1, 2, 0))           # (3, 3, C)
    w9 = jnp.tile(w_hwc.reshape(9, C), (1, W))               # (9, W*C)
    col = jnp.arange(WC) // C                                # column index per lane
    dw_idx = jnp.arange(9) % 3
    keep = ~(((dw_idx[:, None] == 0) & (col[None, :] == 0)) |
             ((dw_idx[:, None] == 2) & (col[None, :] == W - 1)))
    w9 = jnp.where(keep, w9, 0).astype(x.dtype)

    b2 = jnp.tile(bias, W).reshape(1, WC).astype(jnp.float32)

    kernel = functools.partial(_dwconv3x3_kernel, C=C)
    out2 = pl.pallas_call(
        kernel,
        out_shape=jax.ShapeDtypeStruct((B, H, WC), x.dtype),
        grid_spec=pltpu.PrefetchScalarGridSpec(
            num_scalar_prefetch=0,
            grid=(B,),
            in_specs=[
                pl.BlockSpec((1, H, WC), lambda b: (b, 0, 0)),
                pl.BlockSpec((9, WC), lambda b: (0, 0)),
                pl.BlockSpec((1, WC), lambda b: (0, 0)),
            ],
            out_specs=pl.BlockSpec((1, H, WC), lambda b: (b, 0, 0)),
        ),
        compiler_params=pltpu.CompilerParams(
            dimension_semantics=("parallel",),
            vmem_limit_bytes=32 * 1024 * 1024,
        ),
    )(x2, w9, b2)

    # (B, H, W*C) -> (B, N, C): pure reshape (matches flatten(2).transpose(1,2)).
    return out2.reshape(B, N, C)


def _reference(x, weight, bias, H, W):
    """Pure-JAX reference (depthwise lax.conv) for correctness checking."""
    B, N, C = x.shape
    x_nhwc = x.reshape(B, H, W, C)
    w_hwio = jnp.transpose(weight, (2, 3, 1, 0))             # (3, 3, 1, C)
    out = jax.lax.conv_general_dilated(
        x_nhwc, w_hwio, window_strides=(1, 1), padding=((1, 1), (1, 1)),
        dimension_numbers=("NHWC", "HWIO", "NHWC"), feature_group_count=C)
    out = out + bias[None, None, None, :]
    return out.reshape(B, N, C)


if __name__ == "__main__":
    key = jax.random.PRNGKey(0)
    B, C, H, W = 2, 32, 8, 16
    N = H * W

    kx, kw, kb = jax.random.split(key, 3)
    x = jax.random.normal(kx, (B, N, C), dtype=jnp.float32)
    # nn.Conv2d(dim, dim, 3, groups=dim) weight layout: (C, 1, 3, 3)
    weight = jax.random.normal(kw, (C, 1, 3, 3), dtype=jnp.float32) * 0.1
    bias = jax.random.normal(kb, (C,), dtype=jnp.float32) * 0.1

    out = dwconv_forward(x, weight, bias, H, W)
    out = jax.block_until_ready(out)

    ref = _reference(x, weight, bias, H, W)
    assert out.shape == (B, N, C)
    assert jnp.allclose(out, ref, atol=1e-4, rtol=1e-4), "mismatch vs reference"

    print("KERNEL_OK")
</pallas_src>

<mosaic_0001>
module attributes {stable_mosaic.version = 11 : i64} {
  func.func @_dwconv3x3_kernel(%arg0: i32, %arg1: memref<1x8x512xf32, #tpu.memory_space<vmem>>, %arg2: memref<9x512xf32, #tpu.memory_space<vmem>>, %arg3: memref<1x512xf32, #tpu.memory_space<vmem>>, %arg4: memref<1x8x512xf32, #tpu.memory_space<vmem>>) attributes {dimension_semantics = [#tpu.dimension_semantics<parallel>], iteration_bounds = array<i64: 2>, scalar_prefetch = 0 : i64, scratch_operands = 0 : i64, tpu.core_type = #tpu.core_type<tc>, window_params = [{transform_indices = @transform_0, window_bounds = array<i64: 1, 8, 512>}, {pipeline_mode = #tpu.pipeline_mode<synchronous>, transform_indices = @transform_1, window_bounds = array<i64: 9, 512>}, {pipeline_mode = #tpu.pipeline_mode<synchronous>, transform_indices = @transform_2, window_bounds = array<i64: 1, 512>}, {transform_indices = @transform_3, window_bounds = array<i64: 1, 8, 512>}]} {
    %c0 = arith.constant 0 : index
    %c0_0 = arith.constant 0 : index
    %c0_1 = arith.constant 0 : index
    %0 = vector.load %arg1[%c0, %c0_0, %c0_1] : memref<1x8x512xf32, #tpu.memory_space<vmem>>, vector<1x8x512xf32>
    %1 = vector.shape_cast %0 : vector<1x8x512xf32> to vector<8x512xf32>
    %2 = tpu.iota {dimensions = array<i32: 0>} : vector<8x512xi32>
    %cst = arith.constant 0.000000e+00 : f32
    %3 = vector.broadcast %cst : f32 to vector<8x512xf32>
    %c0_i32 = arith.constant 0 : i32
    %4 = vector.broadcast %c0_i32 : i32 to vector<8x512xi32>
    %5 = arith.cmpi eq, %2, %4 : vector<8x512xi32>
    %c1_i32 = arith.constant 1 : i32
    %6 = tpu.dynamic_rotate %1 by %c1_i32 dim 0 : vector<8x512xf32>, i32 -> vector<8x512xf32>
    %7 = arith.select %5, %3, %6 : vector<8x512xi1>, vector<8x512xf32>
    %c7_i32 = arith.constant 7 : i32
    %8 = vector.broadcast %c7_i32 : i32 to vector<8x512xi32>
    %9 = arith.cmpi eq, %2, %8 : vector<8x512xi32>
    %c7_i32_2 = arith.constant 7 : i32
    %10 = tpu.dynamic_rotate %1 by %c7_i32_2 dim 0 : vector<8x512xf32>, i32 -> vector<8x512xf32>
    %11 = arith.select %9, %3, %10 : vector<8x512xi1>, vector<8x512xf32>
    %c0_3 = arith.constant 0 : index
    %c0_4 = arith.constant 0 : index
    %12 = vector.load %arg2[%c0_3, %c0_4] : memref<9x512xf32, #tpu.memory_space<vmem>>, vector<9x512xf32>
    %c0_5 = arith.constant 0 : index
    %c0_6 = arith.constant 0 : index
    %13 = vector.load %arg3[%c0_5, %c0_6] : memref<1x512xf32, #tpu.memory_space<vmem>>, vector<1x512xf32>
    %14 = vector.shape_cast %13 : vector<1x512xf32> to vector<1x512xf32>
    %15 = vector.broadcast %14 : vector<1x512xf32> to vector<8x512xf32>
    %c32_i32 = arith.constant 32 : i32
    %16 = tpu.dynamic_rotate %7 by %c32_i32 dim 1 : vector<8x512xf32>, i32 -> vector<8x512xf32>
    %17 = vector.extract_strided_slice %12 {offsets = [0, 0], sizes = [1, 512], strides = [1, 1]} : vector<9x512xf32> to vector<1x512xf32>
    %18 = vector.broadcast %17 : vector<1x512xf32> to vector<8x512xf32>
    %19 = arith.mulf %16, %18 : vector<8x512xf32>
    %20 = arith.addf %15, %19 : vector<8x512xf32>
    %21 = vector.extract_strided_slice %12 {offsets = [1, 0], sizes = [1, 512], strides = [1, 1]} : vector<9x512xf32> to vector<1x512xf32>
    %22 = vector.broadcast %21 : vector<1x512xf32> to vector<8x512xf32>
    %23 = arith.mulf %7, %22 : vector<8x512xf32>
    %24 = arith.addf %20, %23 : vector<8x512xf32>
    %c480_i32 = arith.constant 480 : i32
    %25 = tpu.dynamic_rotate %7 by %c480_i32 dim 1 : vector<8x512xf32>, i32 -> vector<8x512xf32>
    %26 = vector.extract_strided_slice %12 {offsets = [2, 0], sizes = [1, 512], strides = [1, 1]} : vector<9x512xf32> to vector<1x512xf32>
    %27 = vector.broadcast %26 : vector<1x512xf32> to vector<8x512xf32>
    %28 = arith.mulf %25, %27 : vector<8x512xf32>
    %29 = arith.addf %24, %28 : vector<8x512xf32>
    %c32_i32_7 = arith.constant 32 : i32
    %30 = tpu.dynamic_rotate %1 by %c32_i32_7 dim 1 : vector<8x512xf32>, i32 -> vector<8x512xf32>
    %31 = vector.extract_strided_slice %12 {offsets = [3, 0], sizes = [1, 512], strides = [1, 1]} : vector<9x512xf32> to vector<1x512xf32>
    %32 = vector.broadcast %31 : vector<1x512xf32> to vector<8x512xf32>
    %33 = arith.mulf %30, %32 : vector<8x512xf32>
    %34 = arith.addf %29, %33 : vector<8x512xf32>
    %35 = vector.extract_strided_slice %12 {offsets = [4, 0], sizes = [1, 512], strides = [1, 1]} : vector<9x512xf32> to vector<1x512xf32>
    %36 = vector.broadcast %35 : vector<1x512xf32> to vector<8x512xf32>
    %37 = arith.mulf %1, %36 : vector<8x512xf32>
    %38 = arith.addf %34, %37 : vector<8x512xf32>
    %c480_i32_8 = arith.constant 480 : i32
    %39 = tpu.dynamic_rotate %1 by %c480_i32_8 dim 1 : vector<8x512xf32>, i32 -> vector<8x512xf32>
    %40 = vector.extract_strided_slice %12 {offsets = [5, 0], sizes = [1, 512], strides = [1, 1]} : vector<9x512xf32> to vector<1x512xf32>
    %41 = vector.broadcast %40 : vector<1x512xf32> to vector<8x512xf32>
    %42 = arith.mulf %39, %41 : vector<8x512xf32>
    %43 = arith.addf %38, %42 : vector<8x512xf32>
    %c32_i32_9 = arith.constant 32 : i32
    %44 = tpu.dynamic_rotate %11 by %c32_i32_9 dim 1 : vector<8x512xf32>, i32 -> vector<8x512xf32>
    %45 = vector.extract_strided_slice %12 {offsets = [6, 0], sizes = [1, 512], strides = [1, 1]} : vector<9x512xf32> to vector<1x512xf32>
    %46 = vector.broadcast %45 : vector<1x512xf32> to vector<8x512xf32>
    %47 = arith.mulf %44, %46 : vector<8x512xf32>
    %48 = arith.addf %43, %47 : vector<8x512xf32>
    %49 = vector.extract_strided_slice %12 {offsets = [7, 0], sizes = [1, 512], strides = [1, 1]} : vector<9x512xf32> to vector<1x512xf32>
    %50 = vector.broadcast %49 : vector<1x512xf32> to vector<8x512xf32>
    %51 = arith.mulf %11, %50 : vector<8x512xf32>
    %52 = arith.addf %48, %51 : vector<8x512xf32>
    %c480_i32_10 = arith.constant 480 : i32
    %53 = tpu.dynamic_rotate %11 by %c480_i32_10 dim 1 : vector<8x512xf32>, i32 -> vector<8x512xf32>
    %54 = vector.extract_strided_slice %12 {offsets = [8, 0], sizes = [1, 512], strides = [1, 1]} : vector<9x512xf32> to vector<1x512xf32>
    %55 = vector.broadcast %54 : vector<1x512xf32> to vector<8x512xf32>
    %56 = arith.mulf %53, %55 : vector<8x512xf32>
    %57 = arith.addf %52, %56 : vector<8x512xf32>
    %c0_11 = arith.constant 0 : index
    %c0_12 = arith.constant 0 : index
    %c0_13 = arith.constant 0 : index
    %58 = vector.load %arg4[%c0_11, %c0_12, %c0_13] : memref<1x8x512xf32, #tpu.memory_space<vmem>>, vector<1x8x512xf32>
    %59 = vector.shape_cast %58 : vector<1x8x512xf32> to vector<8x512xf32>
    %60 = vector.shape_cast %57 : vector<8x512xf32> to vector<1x8x512xf32>
    tpu.vector_store %arg4[%c0_11, %c0_12, %c0_13], %60 {strides = array<i32>} : memref<1x8x512xf32, #tpu.memory_space<vmem>>, vector<1x8x512xf32>,
    return
  }
  func.func @transform_0(%arg0: i32) -> (i32, i32, i32) {
    %c0_i32 = arith.constant 0 : i32
    %c0_i32_0 = arith.constant 0 : i32
    %c0_i32_1 = arith.constant 0 : i32
    return %arg0, %c0_i32, %c0_i32_0 : i32, i32, i32
  }
  func.func @transform_1(%arg0: i32) -> (i32, i32) {
    %c0_i32 = arith.constant 0 : i32
    %c0_i32_0 = arith.constant 0 : i32
    %c0_i32_1 = arith.constant 0 : i32
    return %c0_i32, %c0_i32_0 : i32, i32
  }
  func.func @transform_2(%arg0: i32) -> (i32, i32) {
    %c0_i32 = arith.constant 0 : i32
    %c0_i32_0 = arith.constant 0 : i32
    %c0_i32_1 = arith.constant 0 : i32
    return %c0_i32, %c0_i32_0 : i32, i32
  }
  func.func @transform_3(%arg0: i32) -> (i32, i32, i32) {
    %c0_i32 = arith.constant 0 : i32
    %c0_i32_0 = arith.constant 0 : i32
    %c0_i32_1 = arith.constant 0 : i32
    return %arg0, %c0_i32, %c0_i32_0 : i32, i32, i32
  }
}

</mosaic_0001>

<bundles_post_ra>
// kernel: tpu_custom_call.1
= control target key start
LH: loop header
LB: loop body
LE: loop exit
PB: predicated region body
PF: predicated region fallthrough
CT: control target
= control target key end

     0   :  { %8 = vsyncpa [#allocation3], 0  ;;  %s1288_s0 = inlined_call_operand.hbm [shape: f32[2,8,512], index: 0, kind: input, shape index: {}]   ;;  %s1289_s1 = inlined_call_operand.hbm [shape: f32[9,512], index: 1, kind: input, shape index: {}]   ;;  %s1290_s2 = inlined_call_operand.vmem [shape: f32[1,512], index: 2, kind: input, shape index: {}]   ;;  %s1291_s3 = inlined_call_operand.hbm [shape: f32[2,8,512], index: 3, kind: output, shape index: {}]  }
   0x1   :  { %10 = vsyncpa [#allocation3 + $0x1], 0 }
   0x2   :  { %11 = vsyncpa [#allocation6], 0 }
   0x3   :  { %12 = vsyncpa [#allocation4], 0 }
   0x4   :  { %14 = vsyncpa [#allocation4 + $0x1], 0  ;;  %s887_s12 = smov 0   ;;  %s889_s13 = smov 0  }
   0x5   :  { %s891_s14 = smov 0   ;;  %s893_s15 = smov 0  }
   0x6 LB: > { %s908_s16 = sadd.s32 4294967295, %s858_s15   ;;  %s647_s17 = sadd.s32 4294967294, %s858_s15   ;;  %s858_s15 = sphi %s893_s15, %s1311_s15   ;;  %s854_s14 = sphi %s891_s14, %s1310_s14   ;;  %s850_s13 = sphi %s889_s13, %s1309_s13   ;;  %s846_s12 = sphi %s887_s12, %s1308_s12  }
   0x7   : > { %p40_p0 = scmp.ne.s32.totalorder %s850_s13, %s846_s12  ;;  %p1292_p1 = scmp.eq.s32.totalorder %s908_s16, 0 }
   0x8   : > { %p112_p3 = scmp.eq.s32.totalorder %s647_s17, 1  ;;  %p648_p5 = scmp.ge.s32.totalorder %s858_s15, 1 }
   0x9   : > { %p917_p4 = por %p1292_p1, %p40_p0  ;;  %p119_p7 = scmp.lt.s32.totalorder %s858_s15, 3 }
   0xa   : > { %p922_p6 = por %p112_p3, %p40_p0  ;;  %s860_s21 = smov [#allocation5]  }
   0xb   : > { %s1295_s18 = scalar_select %p917_p4, 1, 0 }
   0xc   : > { %s1296_s19 = scalar_select %p922_p6, 1, 0 }
   0xd   : > { %p927_p8 = pnand %p648_p5, %p119_p7  ;;  %s131_s22 = sshll.u32 %s860_s21, 4  ;;  %s931_s22 = int_to_ptr.vmem [resolvable:$true] %s131_s22 }
   0xe   : > { %s943_s24 = sadd.s32 1, %s858_s15   ;;  %s27_s25 = sadd.s32 1, %s854_s14 }
   0xf   : > { %s1297_s20 = scalar_select %p927_p8, 1, 0 }
  0x10   : > { %p677_p9 = pneg %p927_p8  ;;  %s24_s26 = ssub.s32 %s858_s15, %s943_s24 }
  0x11   : > { %s730_s29 = scalar_lea.hbm %s1289_s1, 1024 }
  0x12   : > { %p938_p11 = pnand %p677_p9, %p1292_p1  ;;  %p731_p12 = scmp.ne.s32.totalorder %s1289_s1, %s730_s29 }
  0x13   : > { %p737_p5 = scmp.lt.u32.totalorder %s730_s29, %s1289_s1 }
  0x14   : > { %p732_p13 = pneg %p938_p11 }
  0x16   : > { %p733_p0 = pnand %p732_p13, %p731_p12 }
  0x18   : > { %p734_p3 = pneg %p733_p0 }
  0x1a   : > { %p739_p7 = pnand %p737_p5, %p734_p3 }
  0x1c   : > { %742 = shalt.err (!%p739_p7)
}
  0x1d   : > { %s743_s7 = scalar_lea.vmem %s931_s22, 1024  ;;  %p751_p2 = scmp.lt.s32.totalorder %s931_s22, %s931_s22 }
  0x1e   : > { %p744_p9 = scmp.ne.s32.totalorder %s931_s22, %s743_s7  ;;  %p752_p6 = scmp.lt.s32.totalorder %s743_s7, %s743_s7 }
  0x20   : > { %p746_p10 = pnand %p744_p9, %p732_p13  ;;  %p753_p4 = por %p752_p6, %p751_p2 }
  0x22   : > { %p747_p1 = pneg %p746_p10 }
  0x24   : > { %p754_p8 = pnand %p753_p4, %p747_p1 }
  0x26   : > { %757 = shalt.err (!%p754_p8)
}
  0x27   : > { %s861_s8 = smov 512   ;;  %s862_s9 = smov 32  }
  0x28   : > { %680 = dma.hbm_to_vmem [thread:$0]  (!%p938_p11), %s1289_s1, 1024, %s931_s22, [#allocation6], %s861_s8, %s861_s8, %s862_s9  }
  0x29   : > { %p25_p2 = scmp.eq.s32.totalorder %s24_s26, 0  ;;  %p34_p1 = scmp.ne.s32.totalorder %s854_s14, %s850_s13 }
  0x2a   : > { %p35_p4 = scmp.eq.s32.totalorder %s858_s15, 0  ;;  %p690_p6 = scmp.lt.s32.totalorder %s858_s15, 2 }
  0x2b   : > { %s974_s17 = scalar_select %p25_p2, %s854_s14, %s27_s25  }
  0x2c   : > { %p36_p8 = por %p35_p4, %p34_p1  ;;  %p1299_p10 = scmp.eq.s32.totalorder %s908_s16, 1 }
  0x2d   : > { %s148_s27 = sand.u32 1, %s854_s14   ;;  %s667_s28 = sshll.u32 %s858_s15, 9 }
  0x2e   : > { %p978_p12 = por %p1299_p10, %p34_p1  ;;  %s651_s29 = sshll.u32 %s148_s27, 5 }
  0x2f   : > { %s987_s4 = scalar_lea.hbm %s1288_s0, %s667_s28  ;;  %s152_s22 = scalar_lea.vmem [#allocation2], %s651_s29 }
  0x30   : > { %s160_s25 = sshll.u32 %s152_s22, 4  ;;  %p989_p11 = pnand %p690_p6, %p36_p8  ;;  %s993_s25 = int_to_ptr.vmem [resolvable:$true] %s160_s25 }
  0x31   : > { %s149_s5 = scalar_lea.sflag [#allocation3], %s148_s27  ;;  %s758_s6 = scalar_lea.hbm %s987_s4, 512 }
  0x32   : > { %p759_p13 = scmp.ne.s32.totalorder %s987_s4, %s758_s6  ;;  %p760_p0 = pneg %p989_p11 }
  0x33   : > { %s763_s9 = scalar_lea.hbm %s1288_s0, 1024  ;;  %p764_p7 = scmp.lt.u32.totalorder %s987_s4, %s1288_s0 }
  0x34   : > { %p761_p3 = pnand %p760_p0, %p759_p13  ;;  %p765_p9 = scmp.lt.u32.totalorder %s763_s9, %s758_s6 }
  0x35   : > { %p767_p1 = scmp.lt.u32.totalorder %s758_s6, %s987_s4 }
  0x36   : > { %p762_p5 = pneg %p761_p3  ;;  %p766_p2 = por %p765_p9, %p764_p7 }
  0x38   : > { %p768_p4 = por %p767_p1, %p766_p2 }
  0x3a   : > { %p769_p6 = pnand %p768_p4, %p762_p5 }
  0x3c   : > { %772 = shalt.err (!%p769_p6)
}
  0x3d   : > { %s773_s27 = scalar_lea.vmem %s993_s25, 512  ;;  %s863_s28 = smov [#allocation2]  }
  0x3e   : > { %p774_p8 = scmp.ne.s32.totalorder %s993_s25, %s773_s27  ;;  %s778_s29 = sshll.u32 %s863_s28, 4  ;;  %s779_s29 = int_to_ptr.vmem [resolvable:$false] %s778_s29 }
  0x3f   : > { %s780_s23 = scalar_lea.vmem %s779_s29, 1024  ;;  %p781_p3 = scmp.lt.s32.totalorder %s993_s25, %s779_s29 }
  0x40   : > { %p776_p10 = pnand %p774_p8, %p760_p0  ;;  %p782_p7 = scmp.lt.s32.totalorder %s780_s23, %s773_s27 }
  0x42   : > { %p777_p13 = pneg %p776_p10  ;;  %p783_p9 = por %p782_p7, %p781_p3 }
  0x44   : > { %p784_p2 = pnand %p783_p9, %p777_p13 }
  0x46   : > { %787 = shalt.err (!%p784_p2)
}
  0x47   : > { %684 = dma.hbm_to_vmem [thread:$0]  (!%p989_p11), %s987_s4, 512, %s993_s25, %s149_s5  }
  0x48   : > { %p1302_p5 = scmp.ne.s32.totalorder %s1297_s20, 0 }
  0x49   : > { %s1023_s30 = sand.u32 (!%p1302_p5), 1, %s850_s13   ;;  %p1303_p0 = scmp.ne.s32.totalorder (!%p1302_p5), %s1295_s18, 0 }
  0x4a   : > { %169 = sbr.rel (%p1302_p5) target bundleno = 270 (0x10e), region = 32  ;;  %s655_s22 = sshll.u32 (!%p1302_p5), %s1023_s30, 5 }
  0x4b   : > { %s172_s6 = scalar_lea.sflag (!%p1302_p5), [#allocation3], %s1023_s30  ;;  %s175_s7 = scalar_lea.vmem (!%p1302_p5), [#allocation2], %s655_s22 }
  0x51   : > { %833 = dma.done.wait (%p1303_p0), %s172_s6, 512  }
  0x52   : > { %835 = vsyncadd (%p1303_p0), %s172_s6, 4294966784  ;;  %p1304_p11 = scmp.eq.s32.totalorder %s908_s16, 0 }
  0x54   : > { %837 = dma.done.wait (%p1304_p11), [#allocation6], 1024   ;;  %p1305_p1 = pmov %p1304_p11 }
  0x55   : > { %v206_v0 = vlaneseq  ;;  %v1043_v3 = vld [vmem:[%s175_s7 + $0x10] sm:$0xff]  ;;  %v1048_v5 = vld [vmem:[%s175_s7] sm:$0xff]  ;;  %v205_v11 = vld [vmem:[%s175_s7 + $0x18] sm:$0xff]  ;;  %s864_s18 = smov 32   ;;  %s865_s20 = smov 96  }
  0x56   : > { %839 = vsyncadd (%p1305_p1), [#allocation6], 4294966272  ;;  %v1046_v4 = vld [vmem:[#allocation5 + $0x10] sm:$0xff]  ;;  %v211_v7 = vrot.slane %v1043_v3, 7  ;;  %v209_v9 = vrot.slane %v1048_v5, 7  ;;  %v1056_v10 = vld [vmem:[#allocation5] sm:$0xff] }
  0x57   : > { %v1038_v1 = vshrl.u32 %v206_v0, 7  ;;  %v1058_v12 = vld [vmem:[#allocation5 + $0x18] sm:$0xff]  ;;  %v218_v13 = vrot.slane %v1048_v5, 1  ;;  %v212_v15 = vrot.slane %v205_v11, 7  ;;  %v203_v17 = vld [vmem:[%s175_s7 + $0x8] sm:$0xff]  ;;  %v221_v35 = vrot.slane %v205_v11, 1 }
  0x58   : > { %v1065_v18 = vld [vmem:[#allocation5 + $0x8] sm:$0xff]  ;;  %v210_v22 = vrot.slane %v203_v17, 7  ;;  %v219_v27 = vrot.slane %v203_v17, 1  ;;  %v220_v38 = vrot.slane %v1043_v3, 1  ;;  %v1138_v53 = vand.u32 127, %v206_v0  ;;  %s668_s26 = sshll.u32 %s908_s16, 9 }
  0x59   : > { %v1041_v2 = vsub.s32 1, %v1038_v1  ;;  %vm208_vm0 = vcmp.eq.s32.totalorder %v1038_v1, 0  ;;  %vm217_vm1 = vcmp.eq.s32.totalorder %v1038_v1, 7  ;;  %v490_v6 = vsub.s32 7, %v1038_v1  ;;  %v234_v57 = vld [vmem:[%s1290_s2] sm:$0xf]  ;;  %s1244_s11 = scalar_lea.hbm %s1291_s3, %s668_s26 }
  0x5a   : > { %v215_v20 = vsel %vm208_vm0, 0.0, %v211_v7  ;;  %v213_v21 = vsel %vm208_vm0, 0.0, %v209_v9  ;;  %v216_v26 = vsel %vm208_vm0, 0.0, %v212_v15  ;;  %v214_v29 = vsel %vm208_vm0, 0.0, %v210_v22  ;;  %s201_s5 = scalar_lea.vmem [#allocation7], %s655_s22  ;;  %s553_s16 = scalar_lea.sflag [#allocation4], %s1023_s30 }
  0x5b   : > { %v306_v8 = vrot.slane %v1046_v4, %v1041_v2  ;;  %v298_v14 = vrot.slane %v1056_v10, %v1041_v2  ;;  %v310_v16 = vrot.slane %v1058_v12, %v1041_v2  ;;  %v491_v19 = vrot.slane %v1056_v10, %v490_v6  ;;  %260 = vrot.lane.b32.xlu1 %v215_v20, %s864_s18  ;;  %s567_s8 = sshll.u32 %s201_s5, 4  ;;  %s866_s28 = smov [#allocation7]   ;;  %s1246_s8 = int_to_ptr.vmem [resolvable:$true] %s567_s8 }
  0x5c   : > { %v302_v23 = vrot.slane %v1065_v18, %v1041_v2  ;;  %256 = vrot.lane.b32.xlu0 %v213_v21, %s864_s18  ;;  %v495_v30 = vrot.slane %v1065_v18, %v490_v6  ;;  %v222_v31 = vsel %vm217_vm1, 0.0, %v218_v13  ;;  %v223_v33 = vsel %vm217_vm1, 0.0, %v219_v27  ;;  %s788_s27 = scalar_lea.vmem %s1246_s8, 512  ;;  %s792_s29 = sshll.u32 %s866_s28, 4  ;;  %s793_s29 = int_to_ptr.vmem [resolvable:$false] %s792_s29 }
  0x5d   : > { %v1075_v24 = vmul.f32 %v306_v8, %v215_v20  ;;  %v1078_v25 = vmul.f32 %v298_v14, %v213_v21  ;;  %v1082_v28 = vmul.f32 %v310_v16, %v216_v26  ;;  %v1093_v34 = vmul.f32 %v491_v19, %v222_v31  ;;  %p789_p4 = scmp.ne.s32.totalorder %s1246_s8, %s788_s27  ;;  %s794_s23 = scalar_lea.vmem %s793_s29, 1024 }
  0x5e   : > { %v1089_v32 = vmul.f32 %v302_v23, %v214_v29  ;;  %v1095_v36 = vmul.f32 %v495_v30, %v223_v33  ;;  %v503_v37 = vrot.slane %v1058_v12, %v490_v6  ;;  %v499_v39 = vrot.slane %v1046_v4, %v490_v6  ;;  %p795_p10 = scmp.lt.s32.totalorder %s1246_s8, %s793_s29  ;;  %p796_p13 = scmp.lt.s32.totalorder %s794_s23, %s788_s27 }
  0x5f   : > { %262 = vrot.lane.b32.xlu1 %v216_v26, %s864_s18  ;;  %v225_v40 = vsel %vm217_vm1, 0.0, %v221_v35  ;;  %v224_v42 = vsel %vm217_vm1, 0.0, %v220_v38  ;;  %v394_v44 = vsub.s32 4, %v1038_v1  ;;  %v238_v54 = vsub.s32 0, %v1038_v1  ;;  %p790_p6 = pnand %p789_p4, %p978_p12 }
  0x60   : > { %258 = vrot.lane.b32.xlu0 %v214_v29, %s864_s18  ;;  %v1104_v41 = vmul.f32 %v503_v37, %v225_v40  ;;  %v1108_v43 = vmul.f32 %v499_v39, %v224_v42  ;;  %v1145_v58 = vsub.s32 3, %v1038_v1  ;;  %v246_v59 = vsub.s32 2, %v1038_v1  ;;  %p797_p3 = por %p796_p13, %p795_p10 }
  0x61   : > { %v395_v45 = vrot.slane %v1056_v10, %v394_v44  ;;  %v407_v46 = vrot.slane %v1058_v12, %v394_v44  ;;  %v399_v47 = vrot.slane %v1065_v18, %v394_v44  ;;  %v403_v48 = vrot.slane %v1046_v4, %v394_v44  ;;  %p791_p8 = pneg %p790_p6 }
  0x62   : > { %vm266_vm2 = vcmp.lt.s32.totalorder %v1138_v53, 32  ;;  %v274_v60 = vrot.slane %v1056_v10, %v238_v54  ;;  %v286_v61 = vrot.slane %v1058_v12, %v238_v54  ;;  %v278_v62 = vrot.slane %v1065_v18, %v238_v54 }
  0x63   : > { %321 = vrot.lane.b32.xlu1 %v214_v29, %s865_s20  ;;  %v1116_v49 = vmul.f32 %v395_v45, %v1048_v5  ;;  %v1118_v50 = vmul.f32 %v407_v46, %v205_v11  ;;  %v1120_v51 = vmul.f32 %v399_v47, %v203_v17  ;;  %v1123_v52 = vmul.f32 %v403_v48, %v1043_v3  ;;  %p798_p7 = pnand %p797_p3, %p791_p8 }
  0x64   : > { %319 = vrot.lane.b32.xlu0 %v213_v21, %s865_s20  ;;  %v282_v63 = vrot.slane %v1046_v4, %v238_v54  ;;  %v239_v0 = vrot.slane %v234_v57, %v238_v54  ;;  %vm327_vm3 = vcmp.lt.s32.totalorder %v1138_v53, 96  ;;  %v243_v6 = vrot.slane %v234_v57, %v1041_v2 }
  0x65   : > { %v247_v7 = vrot.slane %v234_v57, %v246_v59  ;;  %v335_v9 = vrot.slane %v1056_v10, %v246_v59  ;;  %v347_v30 = vrot.slane %v1058_v12, %v246_v59 }
  0x67   : > { %325 = vrot.lane.b32.xlu1 %v216_v26, %s865_s20 }
  0x68   : > { %323 = vrot.lane.b32.xlu0 %v215_v20, %s865_s20 }
  0x6b   : > { %358 = vrot.lane.b32.xlu1 %v203_v17, %s864_s18 }
  0x6c   : > { %356 = vrot.lane.b32.xlu0 %v1048_v5, %s864_s18 }
  0x6f   : > { %362 = vrot.lane.b32.xlu1 %v205_v11, %s864_s18 }
  0x70   : > { %360 = vrot.lane.b32.xlu0 %v1043_v3, %s864_s18 }
  0x73   : > { %418 = vrot.lane.b32.xlu1 %v203_v17, %s865_s20 }
  0x74   : > { %416 = vrot.lane.b32.xlu0 %v1048_v5, %s865_s20 }
  0x77   : > { %422 = vrot.lane.b32.xlu1 %v205_v11, %s865_s20 }
  0x78   : > { %420 = vrot.lane.b32.xlu0 %v1043_v3, %s865_s20  ;;  %v251_v3 = vrot.slane %v234_v57, %v1145_v58 }
  0x7b   : > { %454 = vrot.lane.b32.xlu1 %v223_v33, %s864_s18 }
  0x7c   : > { %452 = vrot.lane.b32.xlu0 %v222_v31, %s864_s18 }
  0x7f   : > { %458 = vrot.lane.b32.xlu1 %v225_v40, %s864_s18 }
  0x80   : > { %456 = vrot.lane.b32.xlu0 %v224_v42, %s864_s18 }
  0x83   : > { %514 = vrot.lane.b32.xlu1 %v223_v33, %s865_s20  ;;  %v343_v33 = vrot.slane %v1046_v4, %v246_v59 }
  0x84   : > { %512 = vrot.lane.b32.xlu0 %v222_v31, %s865_s20  ;;  %v339_v31 = vrot.slane %v1065_v18, %v246_v59 }
  0x87   : > { %518 = vrot.lane.b32.xlu1 %v225_v40, %s865_s20 }
  0x88   : > { %516 = vrot.lane.b32.xlu0 %v224_v42, %s865_s20 }
  0xcd   : > { %v261_v55 = vpop.permute.xlu1 %260 }
  0xce   : > { %v257_v56 = vpop.permute.xlu0 %256 }
  0xd1   : > { %v263_v5 = vpop.permute.xlu1 %262 }
  0xd2   : > { %v259_v8 = vpop.permute.xlu0 %258  ;;  %v267_v11 = vsel %vm266_vm2, %v261_v55, %v263_v5  ;;  %v270_v13 = vsel %vm266_vm2, %v263_v5, %v257_v56 }
  0xd3   : > { %v268_v14 = vsel %vm266_vm2, %v259_v8, %v261_v55  ;;  %v269_v15 = vsel %vm266_vm2, %v257_v56, %v259_v8  ;;  %v287_v16 = vmul.f32 %v274_v60, %v270_v13  ;;  %v290_v17 = vmul.f32 %v286_v61, %v267_v11 }
  0xd4   : > { %v288_v19 = vmul.f32 %v278_v62, %v269_v15  ;;  %v289_v2 = vmul.f32 %v282_v63, %v268_v14  ;;  %v430_v61 = vsub.s32 5, %v1038_v1  ;;  %v371_v63 = vrot.slane %v1056_v10, %v1145_v58 }
  0xd5   : > { %v291_v20 = vadd.f32 %v287_v16, %v239_v0  ;;  %v294_v21 = vadd.f32 %v290_v17, %v251_v3  ;;  %v322_v26 = vpop.permute.xlu1 %321  ;;  %v379_v0 = vrot.slane %v1046_v4, %v1145_v58  ;;  %v383_v3 = vrot.slane %v1058_v12, %v1145_v58 }
  0xd6   : > { %v292_v22 = vadd.f32 %v288_v19, %v243_v6  ;;  %v293_v23 = vadd.f32 %v289_v2, %v247_v7  ;;  %v320_v27 = vpop.permute.xlu0 %319  ;;  %v431_v13 = vrot.slane %v1056_v10, %v430_v61 }
  0xd7   : > { %v330_v29 = vsel %vm327_vm3, %v320_v27, %v322_v26  ;;  %v315_v35 = vadd.f32 %v1078_v25, %v291_v20  ;;  %v318_v38 = vadd.f32 %v1082_v28, %v294_v21  ;;  %v375_v28 = vrot.slane %v1065_v18, %v1145_v58 }
  0xd8   : > { %v348_v37 = vmul.f32 %v335_v9, %v330_v29  ;;  %v316_v39 = vadd.f32 %v1089_v32, %v292_v22  ;;  %v317_v40 = vadd.f32 %v1075_v24, %v293_v23  ;;  %v443_v22 = vrot.slane %v1058_v12, %v430_v61 }
  0xd9   : > { %v326_v44 = vpop.permute.xlu1 %325  ;;  %v466_v29 = vsub.s32 6, %v1038_v1 }
  0xda   : > { %v352_v42 = vadd.f32 %v348_v37, %v315_v35  ;;  %v324_v45 = vpop.permute.xlu0 %323  ;;  %v331_v46 = vsel %vm327_vm3, %v326_v44, %v320_v27  ;;  %v439_v27 = vrot.slane %v1046_v4, %v430_v61 }
  0xdb   : > { %v328_v47 = vsel %vm327_vm3, %v324_v45, %v326_v44  ;;  %v329_v48 = vsel %vm327_vm3, %v322_v26, %v324_v45  ;;  %v351_v25 = vmul.f32 %v347_v30, %v331_v46  ;;  %v435_v26 = vrot.slane %v1065_v18, %v430_v61 }
  0xdc   : > { %v349_v54 = vmul.f32 %v339_v31, %v329_v48  ;;  %v350_v55 = vmul.f32 %v343_v33, %v328_v47  ;;  %v471_v45 = vrot.slane %v1065_v18, %v466_v29 }
  0xdd   : > { %v355_v32 = vadd.f32 %v351_v25, %v318_v38  ;;  %v359_v57 = vpop.permute.xlu1 %358 }
  0xde   : > { %v353_v24 = vadd.f32 %v349_v54, %v316_v39  ;;  %v354_v56 = vadd.f32 %v350_v55, %v317_v40  ;;  %v357_v59 = vpop.permute.xlu0 %356  ;;  %v467_v55 = vrot.slane %v1056_v10, %v466_v29 }
  0xdf   : > { %v366_v60 = vsel %vm266_vm2, %v357_v59, %v359_v57 }
  0xe0   : > { %v385_v62 = vmul.f32 %v375_v28, %v366_v60  ;;  %v475_v28 = vrot.slane %v1046_v4, %v466_v29  ;;  %v658_v4 = vld [vmem:[#allocation5 + $0x20] ss:$0 sm:$0xff] }
  0xe1   : > { %v363_v6 = vpop.permute.xlu1 %362 }
  0xe2   : > { %v389_v5 = vadd.f32 %v385_v62, %v353_v24  ;;  %v361_v7 = vpop.permute.xlu0 %360  ;;  %v367_v8 = vsel %vm266_vm2, %v363_v6, %v357_v59 }
  0xe3   : > { %v364_v9 = vsel %vm266_vm2, %v361_v7, %v363_v6  ;;  %v365_v11 = vsel %vm266_vm2, %v359_v57, %v361_v7  ;;  %v384_v14 = vmul.f32 %v371_v63, %v367_v8 }
  0xe4   : > { %v386_v15 = vmul.f32 %v379_v0, %v365_v11  ;;  %v387_v16 = vmul.f32 %v383_v3, %v364_v9  ;;  %v413_v17 = vadd.f32 %v1120_v51, %v389_v5 }
  0xe5   : > { %v388_v58 = vadd.f32 %v384_v14, %v352_v42  ;;  %v419_v20 = vpop.permute.xlu1 %418  ;;  %v661_v14 = vld [vmem:[#allocation5 + $0x38] ss:$0 sm:$0xff] }
  0xe6   : > { %v390_v19 = vadd.f32 %v386_v15, %v354_v56  ;;  %v391_v2 = vadd.f32 %v387_v16, %v355_v32  ;;  %v417_v21 = vpop.permute.xlu0 %416  ;;  %v479_v32 = vrot.slane %v1058_v12, %v466_v29  ;;  %v660_v15 = vld [vmem:[#allocation5 + $0x30] ss:$0 sm:$0xff] }
  0xe7   : > { %v426_v23 = vsel %vm327_vm3, %v417_v21, %v419_v20  ;;  %v412_v30 = vadd.f32 %v1116_v49, %v388_v58 }
  0xe8   : > { %v444_v31 = vmul.f32 %v431_v13, %v426_v23  ;;  %v415_v51 = vadd.f32 %v1118_v50, %v391_v2  ;;  %v414_v33 = vadd.f32 %v1123_v52, %v390_v19 }
  0xe9   : > { %v423_v37 = vpop.permute.xlu1 %422 }
  0xea   : > { %v448_v35 = vadd.f32 %v444_v31, %v412_v30  ;;  %v421_v38 = vpop.permute.xlu0 %420  ;;  %v427_v39 = vsel %vm327_vm3, %v423_v37, %v417_v21 }
  0xeb   : > { %v424_v40 = vsel %vm327_vm3, %v421_v38, %v423_v37  ;;  %v425_v42 = vsel %vm327_vm3, %v419_v20, %v421_v38  ;;  %v447_v1 = vmul.f32 %v443_v22, %v427_v39 }
  0xec   : > { %v445_v44 = vmul.f32 %v435_v26, %v425_v42  ;;  %v446_v49 = vmul.f32 %v439_v27, %v424_v40 }
  0xed   : > { %v451_v50 = vadd.f32 %v447_v1, %v415_v51  ;;  %v455_v47 = vpop.permute.xlu1 %454 }
  0xee   : > { %v449_v46 = vadd.f32 %v445_v44, %v413_v17  ;;  %v450_v52 = vadd.f32 %v446_v49, %v414_v33  ;;  %v453_v48 = vpop.permute.xlu0 %452 }
  0xef   : > { %v462_v25 = vsel %vm266_vm2, %v453_v48, %v455_v47 }
  0xf0   : > { %v481_v54 = vmul.f32 %v471_v45, %v462_v25 }
  0xf1   : > { %v459_v56 = vpop.permute.xlu1 %458 }
  0xf2   : > { %v485_v24 = vadd.f32 %v481_v54, %v449_v46  ;;  %v457_v57 = vpop.permute.xlu0 %456  ;;  %v463_v18 = vsel %vm266_vm2, %v459_v56, %v453_v48 }
  0xf3   : > { %v460_v59 = vsel %vm266_vm2, %v457_v57, %v459_v56  ;;  %v461_v60 = vsel %vm266_vm2, %v455_v47, %v457_v57  ;;  %v480_v61 = vmul.f32 %v467_v55, %v463_v18 }
  0xf4   : > { %v482_v62 = vmul.f32 %v475_v28, %v461_v60  ;;  %v483_v63 = vmul.f32 %v479_v32, %v460_v59  ;;  %v509_v10 = vadd.f32 %v1095_v36, %v485_v24  ;;  %v659_v36 = vld [vmem:[#allocation5 + $0x28] ss:$0 sm:$0xff] }
  0xf5   : > { %v484_v0 = vadd.f32 %v480_v61, %v448_v35  ;;  %v515_v5 = vpop.permute.xlu1 %514 }
  0xf6   : > { %v486_v12 = vadd.f32 %v482_v62, %v450_v52  ;;  %v487_v3 = vadd.f32 %v483_v63, %v451_v50  ;;  %v513_v6 = vpop.permute.xlu0 %512 }
  0xf7   : > { %v522_v7 = vsel %vm327_vm3, %v513_v6, %v515_v5  ;;  %v508_v8 = vadd.f32 %v1093_v34, %v484_v0 }
  0xf8   : > { %v540_v9 = vmul.f32 %v658_v4, %v522_v7  ;;  %v511_v11 = vadd.f32 %v1104_v41, %v487_v3  ;;  %v510_v13 = vadd.f32 %v1108_v43, %v486_v12 }
  0xf9   : > { %v519_v17 = vpop.permute.xlu1 %518 }
  0xfa   : > { %v544_v16 = vadd.f32 %v540_v9, %v508_v8  ;;  %v517_v58 = vpop.permute.xlu0 %516  ;;  %v523_v19 = vsel %vm327_vm3, %v519_v17, %v513_v6 }
  0xfb   : > { %v520_v2 = vsel %vm327_vm3, %v517_v58, %v519_v17  ;;  %v521_v34 = vsel %vm327_vm3, %v515_v5, %v517_v58  ;;  %v543_v41 = vmul.f32 %v661_v14, %v523_v19 }
  0xfc   : > { %548 = vst [vmem:[%s201_s5] sm:$0xff] %v544_v16  ;;  %v541_v43 = vmul.f32 %v659_v36, %v521_v34  ;;  %v542_v20 = vmul.f32 %v660_v15, %v520_v2 }
  0xfd   : > { %v547_v21 = vadd.f32 %v543_v41, %v511_v11 }
  0xfe   : > { %v545_v22 = vadd.f32 %v541_v43, %v509_v10  ;;  %v546_v23 = vadd.f32 %v542_v20, %v510_v13 }
  0xff   : > { %551 = vst [vmem:[%s201_s5 + $0x18] sm:$0xff] %v547_v21 }
 0x100   : > { %549 = vst [vmem:[%s201_s5 + $0x8] sm:$0xff] %v545_v22  ;;  %550 = vst [vmem:[%s201_s5 + $0x10] sm:$0xff] %v546_v23 }
 0x101   : > { %801 = shalt.err (!%p798_p7)
}
 0x102   : > { %s802_s30 = scalar_lea.hbm %s1244_s11, 512  ;;  %s806_s7 = scalar_lea.hbm %s1291_s3, 1024 }
 0x103   : > { %p803_p9 = scmp.ne.s32.totalorder %s1244_s11, %s802_s30  ;;  %p807_p0 = scmp.lt.u32.totalorder %s1244_s11, %s1291_s3 }
 0x104   : > { %p808_p11 = scmp.lt.u32.totalorder %s806_s7, %s802_s30  ;;  %p810_p4 = scmp.lt.u32.totalorder %s802_s30, %s1244_s11 }
 0x105   : > { %p804_p2 = pnand %p803_p9, %p978_p12 }
 0x106   : > { %p809_p1 = por %p808_p11, %p807_p0 }
 0x107   : > { %p805_p5 = pneg %p804_p2 }
 0x108   : > { %p811_p6 = por %p810_p4, %p809_p1 }
 0x10a   : > { %p812_p8 = pnand %p811_p6, %p805_p5 }
 0x10c   : > { %815 = shalt.err (!%p812_p8)
}
 0x10d   : > { %675 = dma.vmem_to_hbm [thread:$0]  (%p978_p12), %s1246_s8, 512, %s1244_s11, %s553_s16  }
 0x10e PF: > { %s579_s4 = sand.u32 1, %s846_s12   ;;  %p1306_p10 = scmp.ne.s32.totalorder %s1296_s19, 0 }
 0x10f   : > { %p1307_p13 = scmp.ge.s32.totalorder %s858_s15, 2  ;;  %s580_s25 = scalar_lea.sflag [#allocation4], %s579_s4 }
 0x111   : > { %p686_p3 = pnand %p1307_p13, %p1306_p10 }
 0x113   : > { %841 = dma.done.wait (!%p686_p3), %s580_s25, 512  }
 0x114   : > { %843 = vsyncadd (!%p686_p3), %s580_s25, 4294966784  ;;  %p17_p7 = scmp.ge.s32.totalorder %s943_s24, 4   ;;  %s1308_s12 = smov %s850_s13 }
 0x115   : > { %s1309_s13 = smov %s854_s14  ;;  %s1310_s14 = smov %s974_s17 }
 0x116   : > { %s1311_s15 = smov %s943_s24  ;;  %19 = sbr.rel (!%p17_p7) target bundleno = 6 (0x6), region = 81 }
 0x11d   :  { %585 = vsyncpa [#allocation3], 1 }
 0x11e   :  { %587 = vsyncpa [#allocation3 + $0x1], 1 }
 0x11f   :  { %588 = vsyncpa [#allocation6], 1 }
 0x120   :  { %589 = vsyncpa [#allocation4], 1 }
 0x121   :  { %591 = vsyncpa [#allocation4 + $0x1], 1 }

</bundles_post_ra>
